<compile_context>
chip_gen: v7x
topology: tpu7x:2x2x1
jax: 0.10.0
libtpu: 0.0.40
codegen_flags: <defaults>
</compile_context>

<pallas_src>
import functools

import jax
import jax.numpy as jnp
from jax.experimental import pallas as pl
from jax.experimental.pallas import tpu as pltpu


def _mhsa_kernel(z_ref, wqkv_ref, wo_ref, bo_ref, *refs,
                 heads, scale, write_attn, compute_dtype):
    if write_attn:
        out_ref, attn_ref, ctx_ref = refs
    else:
        out_ref, ctx_ref = refs
        attn_ref = None

    D = z_ref.shape[-1]
    hd = D // heads
    exact = jnp.dtype(compute_dtype) == jnp.dtype(jnp.float32)

    z = z_ref[0].astype(compute_dtype)                        # (N, D)
    wqkv = wqkv_ref[...].astype(compute_dtype)                # (D, 3D)

    # One lane-dense QKV projection (fills the MXU, unmasked stores) instead of
    # 3*heads skinny (D, hd) matmuls.
    qkv = jnp.dot(z, wqkv, preferred_element_type=jnp.float32)   # (N, 3D) f32

    # Fold the 1/sqrt(head_dim) scale into q once.
    q = (qkv[:, 0:D] * scale).astype(compute_dtype)
    k = qkv[:, D:2 * D].astype(compute_dtype)
    v = qkv[:, 2 * D:3 * D].astype(compute_dtype)

    # Heads stay inside the body (static, unrolled loop); grid is batch-only.
    for h in range(heads):
        sl = slice(h * hd, (h + 1) * hd)
        q_h, k_h, v_h = q[:, sl], k[:, sl], v[:, sl]

        dots = jnp.dot(q_h, k_h.T, preferred_element_type=jnp.float32)  # (N, N)
        m = jnp.max(dots, axis=-1, keepdims=True)
        e = jnp.exp(dots - m)                                           # f32 softmax
        s = jnp.sum(e, axis=-1, keepdims=True)
        if exact:
            attn_h = e / s                               # reference-parity path
        else:
            attn_h = e * pl.reciprocal(s, approx=True)   # EUP slot, frees VALU
        if write_attn:
            attn_ref[0, h] = attn_h

        # Per-head context lands directly in the heads-concatenated scratch.
        ctx_ref[:, sl] = jnp.dot(attn_h.astype(compute_dtype), v_h,
                                 preferred_element_type=jnp.float32)

    # Fused output projection: ctx @ Wo + bo, no HBM round trip for ctx.
    out = jnp.dot(ctx_ref[...].astype(compute_dtype),
                  wo_ref[...].astype(compute_dtype),
                  preferred_element_type=jnp.float32) + bo_ref[...]
    out_ref[0] = out.astype(out_ref.dtype)


def mhsa_forward(z, w_q, w_k, w_v, w_o, b_o, heads, *,
                 compute_dtype=jnp.bfloat16, return_attn=True):
    """z: (B, N, D). w_q/w_k/w_v/w_o: (D, D) applied as x @ W. b_o: (D,)."""
    B, N, D = z.shape
    hd = D // heads
    scale = 1.0 / float(hd) ** 0.5

    # Pack [Wq | Wk | Wv] into one contiguous (D, 3D) slab (would be done once
    # at model init in a real deployment; constant-folded under jit).
    w_qkv = jnp.concatenate([w_q, w_k, w_v], axis=1)

    kernel = functools.partial(_mhsa_kernel, heads=heads, scale=scale,
                               write_attn=return_attn,
                               compute_dtype=compute_dtype)

    out_spec = pl.BlockSpec((1, N, D), lambda b: (b, 0, 0))
    if return_attn:
        out_shapes = (jax.ShapeDtypeStruct((B, N, D), jnp.float32),
                      jax.ShapeDtypeStruct((B, heads, N, N), jnp.float32))
        out_specs = [out_spec,
                     pl.BlockSpec((1, heads, N, N), lambda b: (b, 0, 0, 0))]
    else:
        out_shapes = jax.ShapeDtypeStruct((B, N, D), jnp.float32)
        out_specs = out_spec

    call = pl.pallas_call(
        kernel,
        out_shape=out_shapes,
        grid_spec=pltpu.PrefetchScalarGridSpec(
            num_scalar_prefetch=0,
            grid=(B,),
            in_specs=[
                pl.BlockSpec((1, N, D), lambda b: (b, 0, 0)),     # z
                # Weight index_maps are constant in b -> blocks stay resident
                # in VMEM across the whole grid (no per-step re-DMA).
                pl.BlockSpec((D, 3 * D), lambda b: (0, 0)),       # [Wq|Wk|Wv]
                pl.BlockSpec((D, D), lambda b: (0, 0)),           # Wo
                pl.BlockSpec((1, D), lambda b: (0, 0)),           # bo
            ],
            out_specs=out_specs,
            scratch_shapes=[pltpu.VMEM((N, D), jnp.float32)],     # ctx scratch
        ),
        compiler_params=pltpu.CompilerParams(
            dimension_semantics=("parallel",)),
    )

    res = call(z, w_qkv, w_o, b_o.reshape(1, D))
    if return_attn:
        out, attn = res
        return out, attn
    return res, None


def mhsa_reference(z, w_q, w_k, w_v, w_o, b_o, heads):
    """Pure-JAX reference mirroring the PyTorch forward (eval mode)."""
    B, N, D = z.shape
    hd = D // heads
    q = (z @ w_q).reshape(B, N, heads, hd).transpose(0, 2, 1, 3)
    k = (z @ w_k).reshape(B, N, heads, hd).transpose(0, 2, 1, 3)
    v = (z @ w_v).reshape(B, N, heads, hd).transpose(0, 2, 1, 3)
    dots = jnp.einsum("bhnd,bhmd->bhnm", q, k) / (hd ** 0.5)
    attn = jax.nn.softmax(dots, axis=-1)
    out = jnp.einsum("bhnm,bhmd->bhnd", attn, v)
    out = out.transpose(0, 2, 1, 3).reshape(B, N, D)
    out = out @ w_o + b_o
    return out, attn


if __name__ == "__main__":
    # Small shapes consistent with the module: B=2, N=8 tokens, emb_dim=32, heads=4
    B, N, D, heads = 2, 8, 32, 4

    key = jax.random.PRNGKey(0)
    kz, kq, kk, kv, ko, kb = jax.random.split(key, 6)
    wscale = 1.0 / (D ** 0.5)
    z = jax.random.normal(kz, (B, N, D), dtype=jnp.float32)
    w_q = jax.random.normal(kq, (D, D), dtype=jnp.float32) * wscale
    w_k = jax.random.normal(kk, (D, D), dtype=jnp.float32) * wscale
    w_v = jax.random.normal(kv, (D, D), dtype=jnp.float32) * wscale
    w_o = jax.random.normal(ko, (D, D), dtype=jnp.float32) * wscale
    b_o = jax.random.normal(kb, (D,), dtype=jnp.float32) * wscale

    ref_out, ref_attn = mhsa_reference(z, w_q, w_k, w_v, w_o, b_o, heads)

    # Fast path: bf16 MXU operands, f32 accumulation/softmax, approx reciprocal.
    out, attn = mhsa_forward(z, w_q, w_k, w_v, w_o, b_o, heads,
                             compute_dtype=jnp.bfloat16, return_attn=True)
    out = jax.block_until_ready(out)
    attn = jax.block_until_ready(attn)
    assert out.shape == (B, N, D) and attn.shape == (B, heads, N, N)
    assert jnp.allclose(out, ref_out, atol=5e-2, rtol=5e-2)
    assert jnp.allclose(attn, ref_attn, atol=5e-2, rtol=5e-2)

    # Reference-parity path: f32 operands, exact softmax divide -> tight check.
    out32, attn32 = mhsa_forward(z, w_q, w_k, w_v, w_o, b_o, heads,
                                 compute_dtype=jnp.float32, return_attn=True)
    out32 = jax.block_until_ready(out32)
    attn32 = jax.block_until_ready(attn32)
    assert jnp.allclose(out32, ref_out, atol=1e-4, rtol=1e-4)
    assert jnp.allclose(attn32, ref_attn, atol=1e-4, rtol=1e-4)

    # Flash-style no-probs path: skips the (B, H, N, N) HBM write entirely.
    out_np, _ = mhsa_forward(z, w_q, w_k, w_v, w_o, b_o, heads,
                             compute_dtype=jnp.bfloat16, return_attn=False)
    out_np = jax.block_until_ready(out_np)
    assert jnp.allclose(out_np, ref_out, atol=5e-2, rtol=5e-2)

    print("KERNEL_OK")
</pallas_src>

<mosaic_0001>
module attributes {stable_mosaic.version = 11 : i64} {
  func.func @_mhsa_kernel(%arg0: i32, %arg1: memref<1x8x32xf32, #tpu.memory_space<vmem>>, %arg2: memref<32x96xf32, #tpu.memory_space<vmem>>, %arg3: memref<32x32xf32, #tpu.memory_space<vmem>>, %arg4: memref<1x32xf32, #tpu.memory_space<vmem>>, %arg5: memref<1x8x32xf32, #tpu.memory_space<vmem>>, %arg6: memref<1x4x8x8xf32, #tpu.memory_space<vmem>>, %arg7: memref<8x32xf32, #tpu.memory_space<vmem>>) attributes {dimension_semantics = [#tpu.dimension_semantics<parallel>], iteration_bounds = array<i64: 2>, scalar_prefetch = 0 : i64, scratch_operands = 1 : i64, tpu.core_type = #tpu.core_type<tc>, window_params = [{transform_indices = @transform_0, window_bounds = array<i64: 1, 8, 32>}, {pipeline_mode = #tpu.pipeline_mode<synchronous>, transform_indices = @transform_1, window_bounds = array<i64: 32, 96>}, {pipeline_mode = #tpu.pipeline_mode<synchronous>, transform_indices = @transform_2, window_bounds = array<i64: 32, 32>}, {pipeline_mode = #tpu.pipeline_mode<synchronous>, transform_indices = @transform_3, window_bounds = array<i64: 1, 32>}, {transform_indices = @transform_4, window_bounds = array<i64: 1, 8, 32>}, {transform_indices = @transform_5, window_bounds = array<i64: 1, 4, 8, 8>}]} {
    %c0 = arith.constant 0 : index
    %c0_0 = arith.constant 0 : index
    %c0_1 = arith.constant 0 : index
    %0 = vector.load %arg1[%c0, %c0_0, %c0_1] : memref<1x8x32xf32, #tpu.memory_space<vmem>>, vector<1x8x32xf32>
    %1 = vector.shape_cast %0 : vector<1x8x32xf32> to vector<8x32xf32>
    %2 = arith.truncf %1 : vector<8x32xf32> to vector<8x32xbf16>
    %c0_2 = arith.constant 0 : index
    %c0_3 = arith.constant 0 : index
    %3 = vector.load %arg2[%c0_2, %c0_3] : memref<32x96xf32, #tpu.memory_space<vmem>>, vector<32x96xf32>
    %4 = arith.truncf %3 : vector<32x96xf32> to vector<32x96xbf16>
    %cst = arith.constant dense<0.000000e+00> : vector<8x96xf32>
    %5 = tpu.matmul %2, %4, %cst {dimension_numbers = #tpu.dot_dimension_numbers<[1], [0], [0], [1], [0, 0, 1, 1], [], []>} : vector<8x32xbf16>, vector<32x96xbf16>, vector<8x96xf32> -> vector<8x96xf32>
    %6 = vector.extract_strided_slice %5 {offsets = [0, 0], sizes = [8, 32], strides = [1, 1]} : vector<8x96xf32> to vector<8x32xf32>
    %cst_4 = arith.constant 0.353553385 : f32
    %7 = vector.broadcast %cst_4 : f32 to vector<8x32xf32>
    %8 = arith.mulf %6, %7 : vector<8x32xf32>
    %9 = arith.truncf %8 : vector<8x32xf32> to vector<8x32xbf16>
    %10 = vector.extract_strided_slice %5 {offsets = [0, 32], sizes = [8, 32], strides = [1, 1]} : vector<8x96xf32> to vector<8x32xf32>
    %11 = arith.truncf %10 : vector<8x32xf32> to vector<8x32xbf16>
    %12 = vector.extract_strided_slice %5 {offsets = [0, 64], sizes = [8, 32], strides = [1, 1]} : vector<8x96xf32> to vector<8x32xf32>
    %13 = arith.truncf %12 : vector<8x32xf32> to vector<8x32xbf16>
    %14 = vector.extract_strided_slice %9 {offsets = [0, 0], sizes = [8, 8], strides = [1, 1]} : vector<8x32xbf16> to vector<8x8xbf16>
    %15 = vector.extract_strided_slice %11 {offsets = [0, 0], sizes = [8, 8], strides = [1, 1]} : vector<8x32xbf16> to vector<8x8xbf16>
    %16 = vector.extract_strided_slice %13 {offsets = [0, 0], sizes = [8, 8], strides = [1, 1]} : vector<8x32xbf16> to vector<8x8xbf16>
    %17 = tpu.transpose %15, [1, 0] : vector<8x8xbf16> -> vector<8x8xbf16>
    %cst_5 = arith.constant dense<0.000000e+00> : vector<8x8xf32>
    %18 = tpu.matmul %14, %17, %cst_5 {dimension_numbers = #tpu.dot_dimension_numbers<[1], [0], [0], [1], [0, 0, 1, 1], [], []>} : vector<8x8xbf16>, vector<8x8xbf16>, vector<8x8xf32> -> vector<8x8xf32>
    %cst_6 = arith.constant dense<0xFF800000> : vector<8xf32>
    %19 = vector.multi_reduction <maximumf>, %18, %cst_6 [1] : vector<8x8xf32> to vector<8xf32>
    %20 = vector.shape_cast %19 : vector<8xf32> to vector<8x1xf32>
    %21 = vector.broadcast %20 : vector<8x1xf32> to vector<8x8xf32>
    %22 = arith.subf %18, %21 : vector<8x8xf32>
    %23 = math.exp %22 : vector<8x8xf32>
    %cst_7 = arith.constant dense<0.000000e+00> : vector<8xf32>
    %24 = vector.multi_reduction <add>, %23, %cst_7 [1] : vector<8x8xf32> to vector<8xf32>
    %25 = vector.shape_cast %24 : vector<8xf32> to vector<8x1xf32>
    %26 = tpu.reciprocal %25 {approx = true} : vector<8x1xf32> -> vector<8x1xf32>
    %27 = vector.broadcast %26 : vector<8x1xf32> to vector<8x8xf32>
    %28 = arith.mulf %23, %27 : vector<8x8xf32>
    %c0_8 = arith.constant 0 : index
    %c0_9 = arith.constant 0 : index
    %c0_10 = arith.constant 0 : index
    %c0_11 = arith.constant 0 : index
    %29 = vector.load %arg6[%c0_8, %c0_9, %c0_10, %c0_11] : memref<1x4x8x8xf32, #tpu.memory_space<vmem>>, vector<1x1x8x8xf32>
    %30 = vector.shape_cast %29 : vector<1x1x8x8xf32> to vector<8x8xf32>
    %31 = vector.shape_cast %28 : vector<8x8xf32> to vector<1x1x8x8xf32>
    tpu.vector_store %arg6[%c0_8, %c0_9, %c0_10, %c0_11], %31 {strides = array<i32>} : memref<1x4x8x8xf32, #tpu.memory_space<vmem>>, vector<1x1x8x8xf32>,
    %32 = arith.truncf %28 : vector<8x8xf32> to vector<8x8xbf16>
    %cst_12 = arith.constant dense<0.000000e+00> : vector<8x8xf32>
    %33 = tpu.matmul %32, %16, %cst_12 {dimension_numbers = #tpu.dot_dimension_numbers<[1], [0], [0], [1], [0, 0, 1, 1], [], []>} : vector<8x8xbf16>, vector<8x8xbf16>, vector<8x8xf32> -> vector<8x8xf32>
    %c0_13 = arith.constant 0 : index
    %c0_14 = arith.constant 0 : index
    %34 = vector.load %arg7[%c0_13, %c0_14] : memref<8x32xf32, #tpu.memory_space<vmem>>, vector<8x8xf32>
    tpu.vector_store %arg7[%c0_13, %c0_14], %33 {strides = array<i32>} : memref<8x32xf32, #tpu.memory_space<vmem>>, vector<8x8xf32>,
    %35 = vector.extract_strided_slice %9 {offsets = [0, 8], sizes = [8, 8], strides = [1, 1]} : vector<8x32xbf16> to vector<8x8xbf16>
    %36 = vector.extract_strided_slice %11 {offsets = [0, 8], sizes = [8, 8], strides = [1, 1]} : vector<8x32xbf16> to vector<8x8xbf16>
    %37 = vector.extract_strided_slice %13 {offsets = [0, 8], sizes = [8, 8], strides = [1, 1]} : vector<8x32xbf16> to vector<8x8xbf16>
    %38 = tpu.transpose %36, [1, 0] : vector<8x8xbf16> -> vector<8x8xbf16>
    %cst_15 = arith.constant dense<0.000000e+00> : vector<8x8xf32>
    %39 = tpu.matmul %35, %38, %cst_15 {dimension_numbers = #tpu.dot_dimension_numbers<[1], [0], [0], [1], [0, 0, 1, 1], [], []>} : vector<8x8xbf16>, vector<8x8xbf16>, vector<8x8xf32> -> vector<8x8xf32>
    %cst_16 = arith.constant dense<0xFF800000> : vector<8xf32>
    %40 = vector.multi_reduction <maximumf>, %39, %cst_16 [1] : vector<8x8xf32> to vector<8xf32>
    %41 = vector.shape_cast %40 : vector<8xf32> to vector<8x1xf32>
    %42 = vector.broadcast %41 : vector<8x1xf32> to vector<8x8xf32>
    %43 = arith.subf %39, %42 : vector<8x8xf32>
    %44 = math.exp %43 : vector<8x8xf32>
    %cst_17 = arith.constant dense<0.000000e+00> : vector<8xf32>
    %45 = vector.multi_reduction <add>, %44, %cst_17 [1] : vector<8x8xf32> to vector<8xf32>
    %46 = vector.shape_cast %45 : vector<8xf32> to vector<8x1xf32>
    %47 = tpu.reciprocal %46 {approx = true} : vector<8x1xf32> -> vector<8x1xf32>
    %48 = vector.broadcast %47 : vector<8x1xf32> to vector<8x8xf32>
    %49 = arith.mulf %44, %48 : vector<8x8xf32>
    %c0_18 = arith.constant 0 : index
    %c1 = arith.constant 1 : index
    %c0_19 = arith.constant 0 : index
    %c0_20 = arith.constant 0 : index
    %50 = vector.load %arg6[%c0_18, %c1, %c0_19, %c0_20] : memref<1x4x8x8xf32, #tpu.memory_space<vmem>>, vector<1x1x8x8xf32>
    %51 = vector.shape_cast %50 : vector<1x1x8x8xf32> to vector<8x8xf32>
    %52 = vector.shape_cast %49 : vector<8x8xf32> to vector<1x1x8x8xf32>
    tpu.vector_store %arg6[%c0_18, %c1, %c0_19, %c0_20], %52 {strides = array<i32>} : memref<1x4x8x8xf32, #tpu.memory_space<vmem>>, vector<1x1x8x8xf32>,
    %53 = arith.truncf %49 : vector<8x8xf32> to vector<8x8xbf16>
    %cst_21 = arith.constant dense<0.000000e+00> : vector<8x8xf32>
    %54 = tpu.matmul %53, %37, %cst_21 {dimension_numbers = #tpu.dot_dimension_numbers<[1], [0], [0], [1], [0, 0, 1, 1], [], []>} : vector<8x8xbf16>, vector<8x8xbf16>, vector<8x8xf32> -> vector<8x8xf32>
    %c0_22 = arith.constant 0 : index
    %c8 = arith.constant 8 : index
    %55 = vector.load %arg7[%c0_22, %c8] : memref<8x32xf32, #tpu.memory_space<vmem>>, vector<8x8xf32>
    tpu.vector_store %arg7[%c0_22, %c8], %54 {strides = array<i32>} : memref<8x32xf32, #tpu.memory_space<vmem>>, vector<8x8xf32>,
    %56 = vector.extract_strided_slice %9 {offsets = [0, 16], sizes = [8, 8], strides = [1, 1]} : vector<8x32xbf16> to vector<8x8xbf16>
    %57 = vector.extract_strided_slice %11 {offsets = [0, 16], sizes = [8, 8], strides = [1, 1]} : vector<8x32xbf16> to vector<8x8xbf16>
    %58 = vector.extract_strided_slice %13 {offsets = [0, 16], sizes = [8, 8], strides = [1, 1]} : vector<8x32xbf16> to vector<8x8xbf16>
    %59 = tpu.transpose %57, [1, 0] : vector<8x8xbf16> -> vector<8x8xbf16>
    %cst_23 = arith.constant dense<0.000000e+00> : vector<8x8xf32>
    %60 = tpu.matmul %56, %59, %cst_23 {dimension_numbers = #tpu.dot_dimension_numbers<[1], [0], [0], [1], [0, 0, 1, 1], [], []>} : vector<8x8xbf16>, vector<8x8xbf16>, vector<8x8xf32> -> vector<8x8xf32>
    %cst_24 = arith.constant dense<0xFF800000> : vector<8xf32>
    %61 = vector.multi_reduction <maximumf>, %60, %cst_24 [1] : vector<8x8xf32> to vector<8xf32>
    %62 = vector.shape_cast %61 : vector<8xf32> to vector<8x1xf32>
    %63 = vector.broadcast %62 : vector<8x1xf32> to vector<8x8xf32>
    %64 = arith.subf %60, %63 : vector<8x8xf32>
    %65 = math.exp %64 : vector<8x8xf32>
    %cst_25 = arith.constant dense<0.000000e+00> : vector<8xf32>
    %66 = vector.multi_reduction <add>, %65, %cst_25 [1] : vector<8x8xf32> to vector<8xf32>
    %67 = vector.shape_cast %66 : vector<8xf32> to vector<8x1xf32>
    %68 = tpu.reciprocal %67 {approx = true} : vector<8x1xf32> -> vector<8x1xf32>
    %69 = vector.broadcast %68 : vector<8x1xf32> to vector<8x8xf32>
    %70 = arith.mulf %65, %69 : vector<8x8xf32>
    %c0_26 = arith.constant 0 : index
    %c2 = arith.constant 2 : index
    %c0_27 = arith.constant 0 : index
    %c0_28 = arith.constant 0 : index
    %71 = vector.load %arg6[%c0_26, %c2, %c0_27, %c0_28] : memref<1x4x8x8xf32, #tpu.memory_space<vmem>>, vector<1x1x8x8xf32>
    %72 = vector.shape_cast %71 : vector<1x1x8x8xf32> to vector<8x8xf32>
    %73 = vector.shape_cast %70 : vector<8x8xf32> to vector<1x1x8x8xf32>
    tpu.vector_store %arg6[%c0_26, %c2, %c0_27, %c0_28], %73 {strides = array<i32>} : memref<1x4x8x8xf32, #tpu.memory_space<vmem>>, vector<1x1x8x8xf32>,
    %74 = arith.truncf %70 : vector<8x8xf32> to vector<8x8xbf16>
    %cst_29 = arith.constant dense<0.000000e+00> : vector<8x8xf32>
    %75 = tpu.matmul %74, %58, %cst_29 {dimension_numbers = #tpu.dot_dimension_numbers<[1], [0], [0], [1], [0, 0, 1, 1], [], []>} : vector<8x8xbf16>, vector<8x8xbf16>, vector<8x8xf32> -> vector<8x8xf32>
    %c0_30 = arith.constant 0 : index
    %c16 = arith.constant 16 : index
    %76 = vector.load %arg7[%c0_30, %c16] : memref<8x32xf32, #tpu.memory_space<vmem>>, vector<8x8xf32>
    tpu.vector_store %arg7[%c0_30, %c16], %75 {strides = array<i32>} : memref<8x32xf32, #tpu.memory_space<vmem>>, vector<8x8xf32>,
    %77 = vector.extract_strided_slice %9 {offsets = [0, 24], sizes = [8, 8], strides = [1, 1]} : vector<8x32xbf16> to vector<8x8xbf16>
    %78 = vector.extract_strided_slice %11 {offsets = [0, 24], sizes = [8, 8], strides = [1, 1]} : vector<8x32xbf16> to vector<8x8xbf16>
    %79 = vector.extract_strided_slice %13 {offsets = [0, 24], sizes = [8, 8], strides = [1, 1]} : vector<8x32xbf16> to vector<8x8xbf16>
    %80 = tpu.transpose %78, [1, 0] : vector<8x8xbf16> -> vector<8x8xbf16>
    %cst_31 = arith.constant dense<0.000000e+00> : vector<8x8xf32>
    %81 = tpu.matmul %77, %80, %cst_31 {dimension_numbers = #tpu.dot_dimension_numbers<[1], [0], [0], [1], [0, 0, 1, 1], [], []>} : vector<8x8xbf16>, vector<8x8xbf16>, vector<8x8xf32> -> vector<8x8xf32>
    %cst_32 = arith.constant dense<0xFF800000> : vector<8xf32>
    %82 = vector.multi_reduction <maximumf>, %81, %cst_32 [1] : vector<8x8xf32> to vector<8xf32>
    %83 = vector.shape_cast %82 : vector<8xf32> to vector<8x1xf32>
    %84 = vector.broadcast %83 : vector<8x1xf32> to vector<8x8xf32>
    %85 = arith.subf %81, %84 : vector<8x8xf32>
    %86 = math.exp %85 : vector<8x8xf32>
    %cst_33 = arith.constant dense<0.000000e+00> : vector<8xf32>
    %87 = vector.multi_reduction <add>, %86, %cst_33 [1] : vector<8x8xf32> to vector<8xf32>
    %88 = vector.shape_cast %87 : vector<8xf32> to vector<8x1xf32>
    %89 = tpu.reciprocal %88 {approx = true} : vector<8x1xf32> -> vector<8x1xf32>
    %90 = vector.broadcast %89 : vector<8x1xf32> to vector<8x8xf32>
    %91 = arith.mulf %86, %90 : vector<8x8xf32>
    %c0_34 = arith.constant 0 : index
    %c3 = arith.constant 3 : index
    %c0_35 = arith.constant 0 : index
    %c0_36 = arith.constant 0 : index
    %92 = vector.load %arg6[%c0_34, %c3, %c0_35, %c0_36] : memref<1x4x8x8xf32, #tpu.memory_space<vmem>>, vector<1x1x8x8xf32>
    %93 = vector.shape_cast %92 : vector<1x1x8x8xf32> to vector<8x8xf32>
    %94 = vector.shape_cast %91 : vector<8x8xf32> to vector<1x1x8x8xf32>
    tpu.vector_store %arg6[%c0_34, %c3, %c0_35, %c0_36], %94 {strides = array<i32>} : memref<1x4x8x8xf32, #tpu.memory_space<vmem>>, vector<1x1x8x8xf32>,
    %95 = arith.truncf %91 : vector<8x8xf32> to vector<8x8xbf16>
    %cst_37 = arith.constant dense<0.000000e+00> : vector<8x8xf32>
    %96 = tpu.matmul %95, %79, %cst_37 {dimension_numbers = #tpu.dot_dimension_numbers<[1], [0], [0], [1], [0, 0, 1, 1], [], []>} : vector<8x8xbf16>, vector<8x8xbf16>, vector<8x8xf32> -> vector<8x8xf32>
    %c0_38 = arith.constant 0 : index
    %c24 = arith.constant 24 : index
    %97 = vector.load %arg7[%c0_38, %c24] : memref<8x32xf32, #tpu.memory_space<vmem>>, vector<8x8xf32>
    tpu.vector_store %arg7[%c0_38, %c24], %96 {strides = array<i32>} : memref<8x32xf32, #tpu.memory_space<vmem>>, vector<8x8xf32>,
    %c0_39 = arith.constant 0 : index
    %c0_40 = arith.constant 0 : index
    %98 = vector.load %arg7[%c0_39, %c0_40] : memref<8x32xf32, #tpu.memory_space<vmem>>, vector<8x32xf32>
    %99 = arith.truncf %98 : vector<8x32xf32> to vector<8x32xbf16>
    %c0_41 = arith.constant 0 : index
    %c0_42 = arith.constant 0 : index
    %100 = vector.load %arg3[%c0_41, %c0_42] : memref<32x32xf32, #tpu.memory_space<vmem>>, vector<32x32xf32>
    %101 = arith.truncf %100 : vector<32x32xf32> to vector<32x32xbf16>
    %cst_43 = arith.constant dense<0.000000e+00> : vector<8x32xf32>
    %102 = tpu.matmul %99, %101, %cst_43 {dimension_numbers = #tpu.dot_dimension_numbers<[1], [0], [0], [1], [0, 0, 1, 1], [], []>} : vector<8x32xbf16>, vector<32x32xbf16>, vector<8x32xf32> -> vector<8x32xf32>
    %c0_44 = arith.constant 0 : index
    %c0_45 = arith.constant 0 : index
    %103 = vector.load %arg4[%c0_44, %c0_45] : memref<1x32xf32, #tpu.memory_space<vmem>>, vector<1x32xf32>
    %104 = vector.broadcast %103 : vector<1x32xf32> to vector<8x32xf32>
    %105 = arith.addf %102, %104 : vector<8x32xf32>
    %c0_46 = arith.constant 0 : index
    %c0_47 = arith.constant 0 : index
    %c0_48 = arith.constant 0 : index
    %106 = vector.load %arg5[%c0_46, %c0_47, %c0_48] : memref<1x8x32xf32, #tpu.memory_space<vmem>>, vector<1x8x32xf32>
    %107 = vector.shape_cast %106 : vector<1x8x32xf32> to vector<8x32xf32>
    %108 = vector.shape_cast %105 : vector<8x32xf32> to vector<1x8x32xf32>
    tpu.vector_store %arg5[%c0_46, %c0_47, %c0_48], %108 {strides = array<i32>} : memref<1x8x32xf32, #tpu.memory_space<vmem>>, vector<1x8x32xf32>,
    return
  }
  func.func @transform_0(%arg0: i32) -> (i32, i32, i32) {
    %c0_i32 = arith.constant 0 : i32
    %c0_i32_0 = arith.constant 0 : i32
    %c0_i32_1 = arith.constant 0 : i32
    return %arg0, %c0_i32, %c0_i32_0 : i32, i32, i32
  }
  func.func @transform_1(%arg0: i32) -> (i32, i32) {
    %c0_i32 = arith.constant 0 : i32
    %c0_i32_0 = arith.constant 0 : i32
    %c0_i32_1 = arith.constant 0 : i32
    return %c0_i32, %c0_i32_0 : i32, i32
  }
  func.func @transform_2(%arg0: i32) -> (i32, i32) {
    %c0_i32 = arith.constant 0 : i32
    %c0_i32_0 = arith.constant 0 : i32
    %c0_i32_1 = arith.constant 0 : i32
    return %c0_i32, %c0_i32_0 : i32, i32
  }
  func.func @transform_3(%arg0: i32) -> (i32, i32) {
    %c0_i32 = arith.constant 0 : i32
    %c0_i32_0 = arith.constant 0 : i32
    %c0_i32_1 = arith.constant 0 : i32
    return %c0_i32, %c0_i32_0 : i32, i32
  }
  func.func @transform_4(%arg0: i32) -> (i32, i32, i32) {
    %c0_i32 = arith.constant 0 : i32
    %c0_i32_0 = arith.constant 0 : i32
    %c0_i32_1 = arith.constant 0 : i32
    return %arg0, %c0_i32, %c0_i32_0 : i32, i32, i32
  }
  func.func @transform_5(%arg0: i32) -> (i32, i32, i32, i32) {
    %c0_i32 = arith.constant 0 : i32
    %c0_i32_0 = arith.constant 0 : i32
    %c0_i32_1 = arith.constant 0 : i32
    %c0_i32_2 = arith.constant 0 : i32
    return %arg0, %c0_i32, %c0_i32_0, %c0_i32_1 : i32, i32, i32, i32
  }
}

</mosaic_0001>

<bundles_post_ra>
// kernel: tpu_custom_call.1
= control target key start
LH: loop header
LB: loop body
LE: loop exit
PB: predicated region body
PF: predicated region fallthrough
CT: control target
= control target key end

     0   :  { %11 = vsyncpa [#allocation4], 0  ;;  %s1843_s0 = inlined_call_operand.hbm [shape: f32[2,8,32], index: 0, kind: input, shape index: {}]   ;;  %s1844_s1 = inlined_call_operand.hbm [shape: f32[32,96], index: 1, kind: input, shape index: {}]   ;;  %s1845_s2 = inlined_call_operand.hbm [shape: f32[32,32], index: 2, kind: input, shape index: {}]   ;;  %s1846_s3 = inlined_call_operand.vmem [shape: f32[1,32], index: 3, kind: input, shape index: {}]   ;;  %s1847_s4 = inlined_call_operand.hbm [shape: f32[2,8,32], index: 4, kind: output, shape index: {0}]   ;;  %s1848_s5 = inlined_call_operand.hbm [shape: f32[2,4,8,8], index: 5, kind: output, shape index: {1}]  }
   0x1   :  { %13 = vsyncpa [#allocation4 + $0x1], 0 }
   0x2   :  { %14 = vsyncpa [#allocation7], 0 }
   0x3   :  { %15 = vsyncpa [#allocation5], 0 }
   0x4   :  { %17 = vsyncpa [#allocation5 + $0x1], 0 }
   0x5   :  { %18 = vsyncpa [#allocation11], 0 }
   0x6   :  { %20 = vsyncpa [#allocation11 + $0x1], 0  ;;  %s1491_s18 = smov 0   ;;  %s1493_s19 = smov 0  }
   0x7   :  { %s1495_s20 = smov 0   ;;  %s1497_s21 = smov 0  }
   0x8 LB: > { %s1512_s22 = sadd.s32 4294967295, %s1435_s21   ;;  %s1019_s23 = sadd.s32 4294967294, %s1435_s21   ;;  %s1435_s21 = sphi %s1497_s21, %s1868_s21   ;;  %s1431_s20 = sphi %s1495_s20, %s1867_s20   ;;  %s1427_s19 = sphi %s1493_s19, %s1866_s19   ;;  %s1423_s18 = sphi %s1491_s18, %s1865_s18  }
   0x9   : > { %p46_p0 = scmp.ne.s32.totalorder %s1427_s19, %s1423_s18  ;;  %p1849_p1 = scmp.eq.s32.totalorder %s1512_s22, 0 }
   0xa   : > { %p139_p3 = scmp.eq.s32.totalorder %s1019_s23, 1  ;;  %p1020_p5 = scmp.ge.s32.totalorder %s1435_s21, 1 }
   0xb   : > { %p1521_p4 = por %p1849_p1, %p46_p0  ;;  %p172_p7 = scmp.lt.s32.totalorder %s1435_s21, 3 }
   0xc   : > { %p1526_p6 = por %p139_p3, %p46_p0  ;;  %s1437_s27 = smov [#allocation6]  }
   0xd   : > { %s1852_s24 = scalar_select %p1521_p4, 1, 0 }
   0xe   : > { %s1853_s25 = scalar_select %p1526_p6, 1, 0 }
   0xf   : > { %p1531_p8 = pnand %p1020_p5, %p172_p7  ;;  %s184_s28 = sshll.u32 %s1437_s27, 4  ;;  %s1535_s28 = int_to_ptr.vmem [resolvable:$true] %s184_s28 }
  0x10   : > { %s1438_s30 = smov [#allocation8]   ;;  %s1247_s9 = scalar_lea.hbm %s1844_s1, 512 }
  0x11   : > { %p1154_p9 = pneg %p1531_p8  ;;  %s197_s6 = sshll.u32 %s1438_s30, 4  ;;  %s1546_s6 = int_to_ptr.vmem [resolvable:$true] %s197_s6 }
  0x12   : > { %p1248_p12 = scmp.ne.s32.totalorder %s1844_s1, %s1247_s9  ;;  %p1254_p5 = scmp.lt.u32.totalorder %s1247_s9, %s1844_s1 }
  0x13   : > { %p1542_p11 = pnand %p1154_p9, %p1849_p1 }
  0x15   : > { %p1249_p13 = pneg %p1542_p11 }
  0x17   : > { %p1250_p0 = pnand %p1249_p13, %p1248_p12 }
  0x19   : > { %p1251_p3 = pneg %p1250_p0 }
  0x1b   : > { %p1256_p7 = pnand %p1254_p5, %p1251_p3 }
  0x1d   : > { %1259 = shalt.err (!%p1256_p7)
}
  0x1e   : > { %s1260_s14 = scalar_lea.vmem %s1535_s28, 512  ;;  %p1268_p2 = scmp.lt.s32.totalorder %s1535_s28, %s1535_s28 }
  0x1f   : > { %p1261_p9 = scmp.ne.s32.totalorder %s1535_s28, %s1260_s14  ;;  %p1269_p12 = scmp.lt.s32.totalorder %s1260_s14, %s1260_s14 }
  0x21   : > { %p1263_p10 = pnand %p1261_p9, %p1249_p13  ;;  %p1270_p0 = por %p1269_p12, %p1268_p2 }
  0x23   : > { %p1264_p1 = pneg %p1263_p10 }
  0x25   : > { %p1271_p6 = pnand %p1270_p0, %p1264_p1 }
  0x27   : > { %1274 = shalt.err (!%p1271_p6)
}
  0x28   : > { %s1439_s15 = smov 128   ;;  %s1440_s16 = smov 8  }
  0x29   : > { %1157 = dma.hbm_to_vmem [thread:$0]  (!%p1542_p11), %s1844_s1, 512, %s1535_s28, [#allocation7], %s1439_s15, %s1439_s15, %s1440_s16  }
  0x2a   : > { %s1275_s7 = scalar_lea.hbm %s1845_s2, 512 }
  0x2b   : > { %p1276_p2 = scmp.ne.s32.totalorder %s1845_s2, %s1275_s7  ;;  %p1282_p10 = scmp.lt.u32.totalorder %s1275_s7, %s1845_s2 }
  0x2d   : > { %p1278_p1 = pnand %p1276_p2, %p1249_p13 }
  0x2f   : > { %p1279_p6 = pneg %p1278_p1 }
  0x31   : > { %p1284_p3 = pnand %p1282_p10, %p1279_p6 }
  0x33   : > { %1287 = shalt.err (!%p1284_p3)
}
  0x34   : > { %s1288_s28 = scalar_lea.vmem %s1546_s6, 512  ;;  %p1296_p12 = scmp.lt.s32.totalorder %s1546_s6, %s1546_s6 }
  0x35   : > { %p1289_p5 = scmp.ne.s32.totalorder %s1546_s6, %s1288_s28  ;;  %p1297_p0 = scmp.lt.s32.totalorder %s1288_s28, %s1288_s28 }
  0x37   : > { %p1291_p7 = pnand %p1289_p5, %p1249_p13  ;;  %p1298_p2 = por %p1297_p0, %p1296_p12 }
  0x39   : > { %p1292_p9 = pneg %p1291_p7 }
  0x3b   : > { %p1299_p1 = pnand %p1298_p2, %p1292_p9 }
  0x3d   : > { %1302 = shalt.err (!%p1299_p1)
}
  0x3e   : > { %1160 = dma.hbm_to_vmem [thread:$0]  (!%p1542_p11), %s1845_s2, 512, %s1546_s6, [#allocation7], %s1439_s15, %s1439_s15, %s1440_s16  }
  0x3f   : > { %s1601_s14 = sadd.s32 1, %s1435_s21   ;;  %s33_s29 = sadd.s32 1, %s1431_s20 }
  0x40   : > { %s30_s17 = ssub.s32 %s1435_s21, %s1601_s14  ;;  %p40_p13 = scmp.ne.s32.totalorder %s1431_s20, %s1427_s19 }
  0x41   : > { %p31_p6 = scmp.eq.s32.totalorder %s30_s17, 0  ;;  %p41_p10 = scmp.eq.s32.totalorder %s1435_s21, 0 }
  0x42   : > { %p1856_p3 = scmp.eq.s32.totalorder %s1512_s22, 1  ;;  %p1174_p7 = scmp.lt.s32.totalorder %s1435_s21, 2 }
  0x43   : > { %s1617_s27 = scalar_select %p31_p6, %s1431_s20, %s33_s29  }
  0x44   : > { %p1611_p5 = por %p1856_p3, %p40_p13  ;;  %p42_p9 = por %p41_p10, %p40_p13 }
  0x45   : > { %s214_s30 = sand.u32 1, %s1431_s20   ;;  %s1025_s6 = sshll.u32 %s1435_s21, 7 }
  0x46   : > { %s1857_s23 = scalar_select %p1611_p5, 1, 0 }
  0x47   : > { %s1024_s7 = sshll.u32 %s214_s30, 3  ;;  %s1624_s8 = scalar_lea.hbm %s1843_s0, %s1025_s6 }
  0x48   : > { %s218_s9 = scalar_lea.vmem [#allocation3], %s1024_s7  ;;  %p1628_p11 = pnand %p1174_p7, %p42_p9 }
  0x49   : > { %s225_s10 = sshll.u32 %s218_s9, 4  ;;  %s215_s28 = scalar_lea.sflag [#allocation4], %s214_s30  ;;  %s1626_s10 = int_to_ptr.vmem [resolvable:$true] %s225_s10 }
  0x4a   : > { %s1303_s12 = scalar_lea.hbm %s1624_s8, 128  ;;  %p1305_p0 = pneg %p1628_p11 }
  0x4b   : > { %p1304_p12 = scmp.ne.s32.totalorder %s1624_s8, %s1303_s12  ;;  %s1308_s17 = scalar_lea.hbm %s1843_s0, 256 }
  0x4c   : > { %p1309_p13 = scmp.lt.u32.totalorder %s1624_s8, %s1843_s0  ;;  %p1310_p6 = scmp.lt.u32.totalorder %s1308_s17, %s1303_s12 }
  0x4d   : > { %p1306_p2 = pnand %p1305_p0, %p1304_p12  ;;  %p1312_p3 = scmp.lt.u32.totalorder %s1303_s12, %s1624_s8 }
  0x4e   : > { %p1311_p10 = por %p1310_p6, %p1309_p13 }
  0x4f   : > { %p1307_p1 = pneg %p1306_p2 }
  0x50   : > { %p1313_p7 = por %p1312_p3, %p1311_p10 }
  0x52   : > { %p1314_p9 = pnand %p1313_p7, %p1307_p1 }
  0x54   : > { %1317 = shalt.err (!%p1314_p9)
}
  0x55   : > { %s1318_s30 = scalar_lea.vmem %s1626_s10, 128  ;;  %s1441_s15 = smov [#allocation3]  }
  0x56   : > { %p1319_p12 = scmp.ne.s32.totalorder %s1626_s10, %s1318_s30  ;;  %s1323_s16 = sshll.u32 %s1441_s15, 4  ;;  %s1324_s16 = int_to_ptr.vmem [resolvable:$false] %s1323_s16 }
  0x57   : > { %s1325_s9 = scalar_lea.vmem %s1324_s16, 256  ;;  %p1326_p4 = scmp.lt.s32.totalorder %s1626_s10, %s1324_s16 }
  0x58   : > { %p1321_p2 = pnand %p1319_p12, %p1305_p0  ;;  %p1327_p13 = scmp.lt.s32.totalorder %s1325_s9, %s1318_s30 }
  0x5a   : > { %p1322_p5 = pneg %p1321_p2  ;;  %p1328_p6 = por %p1327_p13, %p1326_p4 }
  0x5c   : > { %p1329_p10 = pnand %p1328_p6, %p1322_p5 }
  0x5e   : > { %1332 = shalt.err (!%p1329_p10)
}
  0x5f   : > { %1164 = dma.hbm_to_vmem [thread:$0]  (!%p1628_p11), %s1624_s8, 128, %s1626_s10, %s215_s28  }
  0x60   : > { %234 = sbr.rel (%p1531_p8) target bundleno = 1609 (0x649), region = 36  ;;  %s1660_s12 = sand.u32 (!%p1531_p8), 1, %s1427_s19  }
  0x61   : > { %s1027_s13 = sshll.u32 (!%p1531_p8), %s1660_s12, 3  ;;  %s237_s29 = scalar_lea.sflag (!%p1531_p8), [#allocation4], %s1660_s12 }
  0x62   : > { %s240_s17 = scalar_lea.vmem (!%p1531_p8), [#allocation3], %s1027_s13  ;;  %p1859_p4 = scmp.ne.s32.totalorder (!%p1531_p8), %s1852_s24, 0 }
  0x67   : > { %1406 = dma.done.wait (%p1859_p4), %s237_s29, 128  }
  0x68   : > { %1408 = vsyncadd (%p1859_p4), %s237_s29, 4294967168  ;;  %p1860_p5 = scmp.eq.s32.totalorder %s1512_s22, 0 }
  0x6a   : > { %1410 = dma.done.wait (%p1860_p5), [#allocation7], 1024   ;;  %p1861_p8 = pmov %p1860_p5 }
  0x6b   : > { %v1442_v0 = vmov 0.0   ;;  %vm1443_vm0 = vmmov 0   ;;  %v283_v1 = vld [vmem:[#allocation6] sm:$0xff]  ;;  %v284_v2 = vld [vmem:[#allocation6 + $0x8] sm:$0xff]  ;;  %v285_v3 = vld [vmem:[#allocation6 + $0x10] sm:$0xff]  ;;  %vm289_vm1 = vcmask 261120  }
  0x6c   : > { %1412 = vsyncadd (%p1861_p8), [#allocation7], 4294966272  ;;  %1076 = vmatprep.subr.bf16.mxu0 %v1442_v0  ;;  %1080 = vmatprep.mubr.msk.bf16.mxu0 %vm1443_vm0, %v1442_v0  ;;  %v287_v4 = vpack.c.bf16 %v284_v2, %v283_v1  ;;  %v286_v5 = vld [vmem:[#allocation6 + $0x18] sm:$0xff]  ;;  %s1444_s24 = smov 96   ;;  %s1445_s26 = smov 120   ;;  %vm339_vm2 = vcmask 64512  }
  0x6d   : > { %1084 = vmatprep.subr.bf16.mxu1 %v1442_v0  ;;  %1086 = vmatprep.mubr.msk.bf16.mxu1 %vm1443_vm0, %v1442_v0  ;;  %v288_v6 = vpack.c.bf16 %v286_v5, %v285_v3  ;;  %v281_v7 = vld [vmem:[%s240_s17] sm:$0xff]  ;;  %s1446_s8 = smov 88   ;;  %s1447_s10 = smov 80   ;;  %vm404_vm3 = vcmask 1043456   ;;  %vm566_vm4 = vcmask 130112   ;;  %vm684_vm5 = vcmask 195712  }
  0x6e   : > { %1077 = vmatpush3.bf16.msra.mxu0 %v287_v4  ;;  %v282_v8 = vpack.c.bf16 %v281_v7, %v281_v7  ;;  %s1448_s11 = smov 112   ;;  %s1449_s28 = smov 72   ;;  %vm802_vm6 = vcmask 261312  }
  0x6f   : > { %1078 = vmatprep.subr.bf16.mxu0 %v1442_v0  ;;  %s1450_s7 = smov 104   ;;  %s1451_s6 = smov 56  }
  0x70   : > { %s1452_s30 = smov 64   ;;  %s1453_s15 = smov 40  }
  0x71   : > { %s1454_s16 = smov 48   ;;  %s1031_s9 = sshll.u32 %s1660_s12, 5 }
  0x72   : > { %1079 = vmatpush3.bf16.msra.mxu0 %v288_v6  ;;  %s1724_s29 = scalar_lea.vmem [#allocation10], %s1031_s9  ;;  %s1455_s17 = smov 8  }
  0x73   : > { %1090 = vmatprep.subr.bf16.mxu0 %v1442_v0  ;;  %p1862_p0 = scmp.ne.s32.totalorder %s1857_s23, 0 }
  0x75   : > { %1081 = vmatmul.mubr.msk.bf16.vlgmr.msra.gmra.mrb[0].mxu0 %vm289_vm1, %v282_v8 }
  0x76   : > { %1092 = vmatprep.mubr.msk.bf16.mxu0 %vm1443_vm0, %v1442_v0 }
 0x148   : > { %v327_v9 = vpop.f32.mrb[0].mxu0 }
 0x149   : > { %v333_v10 = vmul.f32 0.35355338, %v327_v9  ;;  %v1685_v11 = vpack.c.bf16 %v327_v9, %v327_v9  ;;  %v1082_v12 = vpop.f32.mrb[1].mxu0 }
 0x14a   : > { %v330_v13 = vpop.f32.mrb[2].mxu0 }
 0x14b   : > { %v334_v14 = vpack.c.bf16 %v333_v10, %v333_v10  ;;  %337 = vrot.lane.b32.xlu0 %v1685_v11, %s1444_s24  ;;  %v1083_v15 = vpop.f32.mrb[3].mxu0  ;;  %s1456_s24 = smov 16  }
 0x14d   : > { %450 = vrot.lane.b32.xlu1 %v334_v14, %s1445_s26  ;;  %s1457_s26 = smov 24  }
 0x14f   : > { %452 = vrot.lane.b32.xlu0 %v1685_v11, %s1446_s8  ;;  %s1053_s8 = sshll.u32 %s1512_s22, 9 }
 0x151   : > { %570 = vrot.lane.b32.xlu1 %v1685_v11, %s1447_s10  ;;  %s895_s10 = sshll.u32 %s1724_s29, 4  ;;  %s1762_s10 = int_to_ptr.vmem [resolvable:$true] %s895_s10 }
 0x153   : > { %568 = vrot.lane.b32.xlu0 %v334_v14, %s1448_s11 }
 0x155   : > { %688 = vrot.lane.b32.xlu1 %v1685_v11, %s1449_s28 }
 0x157   : > { %686 = vrot.lane.b32.xlu0 %v334_v14, %s1450_s7  ;;  %s1760_s7 = scalar_lea.hbm %s1848_s5, %s1053_s8 }
 0x1bd   : > { %v338_v16 = vpop.permute.xlu0 %337 }
 0x1be   : > { %v344_v17 = vsel %vm339_vm2, %v338_v16, 0 }
 0x1bf   : > { %1085 = vmatpush3.bf16.xpose.msra.mxu1 %v344_v17  ;;  %v451_v19 = vpop.permute.xlu1 %450 }
 0x1c0   : > { %1096 = vmatprep.subr.bf16.mxu1 %v1442_v0 }
 0x1c1   : > { %v453_v18 = vpop.permute.xlu0 %452 }
 0x1c2   : > { %v458_v20 = vsel %vm339_vm2, %v453_v18, 0 }
 0x1c3   : > { %v571_v21 = vpop.permute.xlu1 %570 }
 0x1c4   : > { %v576_v22 = vsel %vm339_vm2, %v571_v21, 0 }
 0x1c5   : > { %v569_v24 = vpop.permute.xlu0 %568 }
 0x1c6   : > { %1087 = vmatmul.mubr.msk.bf16.vlgmr.msra.gmra.mrb[0].mxu1 %vm339_vm2, %v334_v14 }
 0x1c7   : > { %1097 = vmatpush3.bf16.xpose.msra.mxu1 %v458_v20  ;;  %1098 = vmatprep.mubr.msk.bf16.mxu1 %vm1443_vm0, %v1442_v0  ;;  %v689_v23 = vpop.permute.xlu1 %688 }
 0x1c8   : > { %1108 = vmatprep.subr.bf16.mxu1 %v1442_v0  ;;  %v694_v25 = vsel %vm339_vm2, %v689_v23, 0 }
 0x1c9   : > { %v687_v26 = vpop.permute.xlu0 %686 }
 0x1ce   : > { %1099 = vmatmul.mubr.msk.bf16.vlgmr.msra.gmra.mrb[4].mxu1 %vm339_vm2, %v451_v19 }
 0x1cf   : > { %1109 = vmatpush3.bf16.xpose.msra.mxu1 %v576_v22  ;;  %1110 = vmatprep.mubr.msk.bf16.mxu1 %vm1443_vm0, %v1442_v0 }
 0x1d0   : > { %1120 = vmatprep.subr.bf16.mxu1 %v1442_v0 }
 0x1d6   : > { %1111 = vmatmul.mubr.msk.bf16.vlgmr.msra.gmra.mrb[8].mxu1 %vm339_vm2, %v569_v24 }
 0x1d7   : > { %1121 = vmatpush3.bf16.xpose.msra.mxu1 %v694_v25  ;;  %1122 = vmatprep.mubr.msk.bf16.mxu1 %vm1443_vm0, %v1442_v0 }
 0x1d8   : > { %1132 = vmatprep.subr.bf16.mxu1 %v1442_v0 }
 0x1de   : > { %1123 = vmatmul.mubr.msk.bf16.vlgmr.msra.gmra.mrb[12].mxu1 %vm339_vm2, %v687_v26 }
 0x1df   : > { %1136 = vmatprep.mubr.msk.bf16.mxu1 %vm1443_vm0, %v1442_v0 }
 0x299   : > { %v380_v27 = vpop.f32.mrb[0].mxu1 }
 0x29a   : > { %v1088_v28 = vpop.f32.mrb[1].mxu1  ;;  %v386_v29 = vsel %vm339_vm2, %v380_v27, -inf }
 0x29b   : > { %387 = vmax.xlane.f32.xlu1 %v386_v29  ;;  %v383_v30 = vpop.f32.mrb[2].mxu1 }
 0x29c   : > { %v1089_v31 = vpop.f32.mrb[3].mxu1 }
 0x2a1   : > { %v494_v32 = vpop.f32.mrb[4].mxu1 }
 0x2a2   : > { %v1100_v33 = vpop.f32.mrb[5].mxu1  ;;  %v500_v34 = vsel %vm339_vm2, %v494_v32, -inf }
 0x2a3   : > { %501 = vmax.xlane.f32.xlu0 %v500_v34  ;;  %v497_v35 = vpop.f32.mrb[6].mxu1 }
 0x2a4   : > { %v1101_v36 = vpop.f32.mrb[7].mxu1 }
 0x2a5   : > { %v806_v36 = vld [vmem:[#allocation8] sm:$0xff] }
 0x2a9   : > { %v612_v37 = vpop.f32.mrb[8].mxu1 }
 0x2aa   : > { %v1112_v38 = vpop.f32.mrb[9].mxu1  ;;  %v618_v39 = vsel %vm339_vm2, %v612_v37, -inf }
 0x2ab   : > { %619 = vmax.xlane.f32.xlu0 %v618_v39  ;;  %v615_v40 = vpop.f32.mrb[10].mxu1  ;;  %v808_v38 = vld [vmem:[#allocation8 + $0x10] sm:$0xff] }
 0x2ac   : > { %v1113_v41 = vpop.f32.mrb[11].mxu1  ;;  %v809_v40 = vld [vmem:[#allocation8 + $0x18] sm:$0xff] }
 0x2ad   : > { %v811_v41 = vpack.c.bf16 %v809_v40, %v808_v38 }
 0x2b1   : > { %v730_v42 = vpop.f32.mrb[12].mxu1 }
 0x2b2   : > { %v1124_v43 = vpop.f32.mrb[13].mxu1  ;;  %v736_v44 = vsel %vm339_vm2, %v730_v42, -inf }
 0x2b3   : > { %737 = vmax.xlane.f32.xlu1 %v736_v44  ;;  %v733_v45 = vpop.f32.mrb[14].mxu1 }
 0x2b4   : > { %v1125_v46 = vpop.f32.mrb[15].mxu1 }
 0x328   : > { %v388_v47 = vpop.xlane.xlu1 %387 }
 0x329   : > { %v389_v48 = vsub.f32 %v380_v27, %v388_v47 }
 0x32b   : > { %v390_v49 = vmul.f32 1.442695, %v389_v48 }
 0x32d   : > { %1231 = vpow2.f32 %v390_v49 }
 0x330   : > { %v502_v50 = vpop.xlane.xlu0 %501 }
 0x331   : > { %v503_v51 = vsub.f32 %v494_v32, %v502_v50 }
 0x333   : > { %v504_v52 = vmul.f32 1.442695, %v503_v51 }
 0x335   : > { %1233 = vpow2.f32 %v504_v52 }
 0x337   : > { %v1232_v53 = vpop.eup %1231 }
 0x338   : > { %v620_v54 = vpop.xlane.xlu0 %619  ;;  %v392_v55 = vsel %vm339_vm2, %v1232_v53, 0.0 }
 0x339   : > { %v621_v56 = vsub.f32 %v612_v37, %v620_v54  ;;  %393 = vadd.xlane.f32.xlu0 %v392_v55  ;;  %v807_v37 = vld [vmem:[#allocation8 + $0x8] sm:$0xff] }
 0x33a   : > { %v810_v39 = vpack.c.bf16 %v807_v37, %v806_v36 }
 0x33b   : > { %v622_v57 = vmul.f32 1.442695, %v621_v56 }
 0x33c   : > { %1133 = vmatpush3.bf16.msra.mxu1 %v810_v39 }
 0x33d   : > { %1235 = vpow2.f32 %v622_v57  ;;  %1134 = vmatprep.subr.bf16.mxu1 %v1442_v0 }
 0x33f   : > { %v1234_v58 = vpop.eup %1233 }
 0x340   : > { %v506_v59 = vsel %vm339_vm2, %v1234_v58, 0.0  ;;  %v738_v62 = vpop.xlane.xlu1 %737  ;;  %1135 = vmatpush3.bf16.msra.mxu1 %v811_v41 }
 0x341   : > { %507 = vadd.xlane.f32.xlu1 %v506_v59  ;;  %v739_v63 = vsub.f32 %v730_v42, %v738_v62 }
 0x343   : > { %v740_v1 = vmul.f32 1.442695, %v739_v63 }
 0x345   : > { %1237 = vpow2.f32 %v740_v1 }
 0x347   : > { %v1236_v60 = vpop.eup %1235 }
 0x348   : > { %v624_v61 = vsel %vm339_vm2, %v1236_v60, 0.0 }
 0x349   : > { %625 = vadd.xlane.f32.xlu0 %v624_v61 }
 0x34f   : > { %v1238_v2 = vpop.eup %1237 }
 0x350   : > { %v742_v3 = vsel %vm339_vm2, %v1238_v2, 0.0 }
 0x352   : > { %514 = vrot.lane.b32.xlu1 %v1685_v11, %s1451_s6  ;;  %s869_s6 = scalar_lea.sflag [#allocation11], %s1660_s12 }
 0x35f   : > { %399 = vrot.lane.b32.xlu0 %v1685_v11, %s1452_s30  ;;  %s1333_s30 = scalar_lea.vmem %s1762_s10, 512 }
 0x360   : > { %p1334_p11 = scmp.ne.s32.totalorder %s1762_s10, %s1333_s30 }
 0x362   : > { %p1335_p1 = pnand %p1334_p11, %p1862_p0 }
 0x363   : > { %750 = vrot.lane.b32.xlu0 %v1685_v11, %s1453_s15  ;;  %s1458_s15 = smov [#allocation10]  }
 0x364   : > { %p1336_p3 = pneg %p1335_p1 }
 0x376   : > { %743 = vadd.xlane.f32.xlu1 %v742_v3 }
 0x387   : > { %632 = vrot.lane.b32.xlu1 %v1685_v11, %s1454_s16  ;;  %s1337_s16 = sshll.u32 %s1458_s15, 4  ;;  %s1338_s16 = int_to_ptr.vmem [resolvable:$false] %s1337_s16 }
 0x388   : > { %s1339_s9 = scalar_lea.vmem %s1338_s16, 1024  ;;  %p1340_p7 = scmp.lt.s32.totalorder %s1762_s10, %s1338_s16 }
 0x389   : > { %p1341_p9 = scmp.lt.s32.totalorder %s1339_s9, %s1333_s30 }
 0x38b   : > { %p1342_p12 = por %p1341_p9, %p1340_p7 }
 0x38d   : > { %p1343_p2 = pnand %p1342_p12, %p1336_p3 }
 0x3c6   : > { %v394_v4 = vpop.xlane.xlu0 %393 }
 0x3c7   : > { %1239 = vrcp.f32 %v394_v4 }
 0x3ce   : > { %v508_v5 = vpop.xlane.xlu1 %507 }
 0x3cf   : > { %1241 = vrcp.f32 %v508_v5 }
 0x3d1   : > { %v1240_v6 = vpop.eup %1239 }
 0x3d2   : > { %v396_v7 = vmul.f32 %v1240_v6, %v1232_v53  ;;  %v515_v13 = vpop.permute.xlu1 %514 }
 0x3d3   : > { %v520_v15 = vsel %vm404_vm3, %v515_v13, 0 }
 0x3d4   : > { %397 = vst.msk [vmem:[%s1724_s29] sm:$0xff] %vm339_vm2, %v396_v7  ;;  %v398_v14 = vpack.c.bf16 %v396_v7, %v396_v7 }
 0x3d6   : > { %v626_v8 = vpop.xlane.xlu0 %625 }
 0x3d7   : > { %1243 = vrcp.f32 %v626_v8 }
 0x3d9   : > { %v1242_v9 = vpop.eup %1241 }
 0x3da   : > { %v510_v10 = vmul.f32 %v1242_v9, %v1234_v58  ;;  %v400_v11 = vpop.permute.xlu0 %399 }
 0x3db   : > { %v406_v12 = vsel %vm404_vm3, %v400_v11, 0 }
 0x3dc   : > { %1036 = vst.msk [vmem:[%s1724_s29 + $0x8] sm:$0xff] %vm339_vm2, %v510_v10  ;;  %1091 = vmatpush3.bf16.msra.mxu0 %v406_v12  ;;  %v513_v18 = vpack.c.bf16 %v510_v10, %v510_v10 }
 0x3dd   : > { %1102 = vmatprep.subr.bf16.mxu0 %v1442_v0 }
 0x3de   : > { %v751_v22 = vpop.permute.xlu0 %750 }
 0x3df   : > { %1093 = vmatmul.mubr.msk.bf16.vlgmr.msra.gmra.mrb[4].mxu0 %vm339_vm2, %v398_v14  ;;  %v756_v24 = vsel %vm404_vm3, %v751_v22, 0 }
 0x3e0   : > { %1103 = vmatpush3.bf16.msra.mxu0 %v520_v15  ;;  %1104 = vmatprep.mubr.msk.bf16.mxu0 %vm1443_vm0, %v1442_v0 }
 0x3e1   : > { %v1244_v16 = vpop.eup %1243  ;;  %1114 = vmatprep.subr.bf16.mxu0 %v1442_v0 }
 0x3e2   : > { %v628_v17 = vmul.f32 %v1244_v16, %v1236_v60 }
 0x3e4   : > { %1039 = vst.msk [vmem:[%s1724_s29 + $0x10] sm:$0xff] %vm339_vm2, %v628_v17  ;;  %v631_v23 = vpack.c.bf16 %v628_v17, %v628_v17 }
 0x3e7   : > { %1105 = vmatmul.mubr.msk.bf16.vlgmr.msra.gmra.mrb[8].mxu0 %vm339_vm2, %v513_v18 }
 0x3e8   : > { %1116 = vmatprep.mubr.msk.bf16.mxu0 %vm1443_vm0, %v1442_v0 }
 0x403   : > { %v744_v19 = vpop.xlane.xlu1 %743 }
 0x404   : > { %1245 = vrcp.f32 %v744_v19 }
 0x407   : > { %v633_v20 = vpop.permute.xlu1 %632 }
 0x408   : > { %v638_v21 = vsel %vm404_vm3, %v633_v20, 0 }
 0x409   : > { %1115 = vmatpush3.bf16.msra.mxu0 %v638_v21 }
 0x40a   : > { %1126 = vmatprep.subr.bf16.mxu0 %v1442_v0 }
 0x40c   : > { %1117 = vmatmul.mubr.msk.bf16.vlgmr.msra.gmra.mrb[12].mxu0 %vm339_vm2, %v631_v23 }
 0x40d   : > { %1127 = vmatpush3.bf16.msra.mxu0 %v756_v24  ;;  %1128 = vmatprep.mubr.msk.bf16.mxu0 %vm1443_vm0, %v1442_v0 }
 0x40e   : > { %v1246_v25 = vpop.eup %1245 }
 0x40f   : > { %v746_v26 = vmul.f32 %v1246_v25, %v1238_v2 }
 0x411   : > { %1042 = vst.msk [vmem:[%s1724_s29 + $0x18] sm:$0xff] %vm339_vm2, %v746_v26  ;;  %v749_v27 = vpack.c.bf16 %v746_v26, %v746_v26 }
 0x414   : > { %1129 = vmatmul.mubr.msk.bf16.vlgmr.msra.gmra.mrb[16].mxu0 %vm339_vm2, %v749_v27 }
 0x4b2   : > { %v442_v28 = vpop.f32.mrb[4].mxu0 }
 0x4b3   : > { %448 = vst.msk [vmem:[#allocation2] sm:$0xff] %vm339_vm2, %v442_v28  ;;  %v1094_v29 = vpop.f32.mrb[5].mxu0 }
 0x4b4   : > { %v445_v30 = vpop.f32.mrb[6].mxu0 }
 0x4b5   : > { %v1095_v31 = vpop.f32.mrb[7].mxu0 }
 0x4ba   : > { %v556_v32 = vpop.f32.mrb[8].mxu0 }
 0x4bb   : > { %563 = vrot.lane.b32.xlu1 %v556_v32, %s1455_s17  ;;  %v1106_v33 = vpop.f32.mrb[9].mxu0 }
 0x4bc   : > { %v559_v34 = vpop.f32.mrb[10].mxu0 }
 0x4bd   : > { %v1107_v35 = vpop.f32.mrb[11].mxu0 }
 0x4df   : > { %v674_v42 = vpop.f32.mrb[12].mxu0 }
 0x4e0   : > { %681 = vrot.lane.b32.xlu0 %v674_v42, %s1456_s24  ;;  %v1118_v43 = vpop.f32.mrb[13].mxu0 }
 0x4e1   : > { %v677_v44 = vpop.f32.mrb[14].mxu0 }
 0x4e2   : > { %v1119_v45 = vpop.f32.mrb[15].mxu0 }
 0x4e7   : > { %v792_v46 = vpop.f32.mrb[16].mxu0 }
 0x4e8   : > { %799 = vrot.lane.b32.xlu1 %v792_v46, %s1457_s26  ;;  %v1130_v47 = vpop.f32.mrb[17].mxu0 }
 0x4e9   : > { %v795_v48 = vpop.f32.mrb[18].mxu0 }
 0x4ea   : > { %v1131_v49 = vpop.f32.mrb[19].mxu0 }
 0x52d   : > { %v564_v50 = vpop.permute.xlu1 %563 }
 0x52e   : > { %567 = vst.msk [vmem:[#allocation2] sm:$0xff] %vm566_vm4, %v564_v50 }
 0x552   : > { %v682_v0 = vpop.permute.xlu0 %681 }
 0x553   : > { %685 = vst.msk [vmem:[#allocation2] sm:$0xff] %vm684_vm5, %v682_v0 }
 0x55a   : > { %v800_v51 = vpop.permute.xlu1 %799 }
 0x55b   : > { %803 = vst.msk [vmem:[#allocation2] sm:$0xff] %vm802_vm6, %v800_v51 }
 0x562   : > { %v804_v52 = vld [vmem:[#allocation2] sm:$0xff] }
 0x563   : > { %v805_v53 = vpack.c.bf16 %v804_v52, %v804_v52 }
 0x565   : > { %1137 = vmatmul.mubr.msk.bf16.vlgmr.msra.gmra.mrb[16].mxu1 %vm289_vm1, %v805_v53 }
 0x566   : > { %1346 = shalt.err (!%p1343_p2)
}
 0x567   : > { %s1347_s29 = scalar_lea.hbm %s1760_s7, 512  ;;  %s1351_s8 = scalar_lea.hbm %s1848_s5, 1024 }
 0x568   : > { %p1348_p13 = scmp.ne.s32.totalorder %s1760_s7, %s1347_s29  ;;  %p1352_p4 = scmp.lt.u32.totalorder %s1760_s7, %s1848_s5 }
 0x569   : > { %p1353_p5 = scmp.lt.u32.totalorder %s1351_s8, %s1347_s29  ;;  %p1355_p11 = scmp.lt.u32.totalorder %s1347_s29, %s1760_s7 }
 0x56a   : > { %p1349_p6 = pnand %p1348_p13, %p1862_p0 }
 0x56b   : > { %p1354_p8 = por %p1353_p5, %p1352_p4 }
 0x56c   : > { %p1350_p10 = pneg %p1349_p6 }
 0x56d   : > { %p1356_p1 = por %p1355_p11, %p1354_p8 }
 0x56f   : > { %p1357_p3 = pnand %p1356_p1, %p1350_p10 }
 0x571   : > { %1360 = shalt.err (!%p1357_p3)
}
 0x572   : > { %s1459_s30 = smov 128   ;;  %v1044_v54 = vld [vmem:[%s1846_s3] ss:$0 sm:$0xff]  ;;  %s1048_s9 = sshll.u32 %s1512_s22, 7 }
 0x573   : > { %1151 = dma.vmem_to_hbm [thread:$0]  (%p1862_p0), %s1762_s10, 512, %s1760_s7, %s869_s6, %s1459_s30, %s1459_s30, %s1455_s17  }
 0x574   : > { %s272_s29 = scalar_lea.vmem [#allocation9], %s1027_s13  ;;  %s1798_s11 = scalar_lea.hbm %s1847_s4, %s1048_s9 }
 0x575   : > { %s882_s24 = sshll.u32 %s272_s29, 4  ;;  %s864_s22 = scalar_lea.sflag [#allocation5], %s1660_s12  ;;  %s1800_s24 = int_to_ptr.vmem [resolvable:$true] %s882_s24 }
 0x576   : > { %s1361_s13 = scalar_lea.vmem %s1800_s24, 128  ;;  %s1460_s17 = smov [#allocation9]  }
 0x577   : > { %p1362_p7 = scmp.ne.s32.totalorder %s1800_s24, %s1361_s13  ;;  %s1365_s10 = sshll.u32 %s1460_s17, 4  ;;  %s1366_s10 = int_to_ptr.vmem [resolvable:$false] %s1365_s10 }
 0x578   : > { %s1367_s7 = scalar_lea.vmem %s1366_s10, 256  ;;  %p1368_p2 = scmp.lt.s32.totalorder %s1800_s24, %s1366_s10 }
 0x579   : > { %p1363_p9 = pnand %p1362_p7, %p1862_p0  ;;  %p1369_p13 = scmp.lt.s32.totalorder %s1367_s7, %s1361_s13 }
 0x57b   : > { %p1364_p12 = pneg %p1363_p9  ;;  %p1370_p6 = por %p1369_p13, %p1368_p2 }
 0x57d   : > { %p1371_p10 = pnand %p1370_p6, %p1364_p12 }
 0x638   : > { %v856_v55 = vpop.f32.mrb[16].mxu1 }
 0x639   : > { %v857_v56 = vadd.f32 %v1044_v54, %v856_v55  ;;  %v1138_v57 = vpop.f32.mrb[17].mxu1 }
 0x63a   : > { %v859_v58 = vpop.f32.mrb[18].mxu1 }
 0x63b   : > { %v1139_v59 = vpop.f32.mrb[19].mxu1  ;;  %862 = vst.msk [vmem:[%s272_s29] sm:$0xff] %vm289_vm1, %v857_v56 }
 0x63c   : > { %1374 = shalt.err (!%p1371_p10)
}
 0x63d   : > { %s1375_s12 = scalar_lea.hbm %s1798_s11, 128  ;;  %s1379_s30 = scalar_lea.hbm %s1847_s4, 256 }
 0x63e   : > { %p1376_p4 = scmp.ne.s32.totalorder %s1798_s11, %s1375_s12  ;;  %p1380_p11 = scmp.lt.u32.totalorder %s1798_s11, %s1847_s4 }
 0x63f   : > { %p1381_p1 = scmp.lt.u32.totalorder %s1379_s30, %s1375_s12  ;;  %p1383_p7 = scmp.lt.u32.totalorder %s1375_s12, %s1798_s11 }
 0x640   : > { %p1377_p5 = pnand %p1376_p4, %p1862_p0 }
 0x641   : > { %p1382_p3 = por %p1381_p1, %p1380_p11 }
 0x642   : > { %p1378_p8 = pneg %p1377_p5 }
 0x643   : > { %p1384_p9 = por %p1383_p7, %p1382_p3 }
 0x645   : > { %p1385_p12 = pnand %p1384_p9, %p1378_p8 }
 0x647   : > { %1388 = shalt.err (!%p1385_p12)
}
 0x648   : > { %1150 = dma.vmem_to_hbm [thread:$0]  (%p1862_p0), %s1800_s24, 128, %s1798_s11, %s864_s22  }
 0x649 PF: > { %s910_s9 = sand.u32 1, %s1423_s18   ;;  %p1863_p2 = scmp.ne.s32.totalorder %s1853_s25, 0 }
 0x64a   : > { %p1864_p13 = scmp.ge.s32.totalorder %s1435_s21, 2  ;;  %s911_s29 = scalar_lea.sflag [#allocation5], %s910_s9 }
 0x64c   : > { %p1166_p6 = pnand %p1864_p13, %p1863_p2 }
 0x64e   : > { %1414 = dma.done.wait (!%p1166_p6), %s911_s29, 128  }
 0x64f   : > { %1416 = vsyncadd (!%p1166_p6), %s911_s29, 4294967168  ;;  %s920_s26 = scalar_lea.sflag [#allocation11], %s910_s9 }
 0x650   : > { %1418 = dma.done.wait (!%p1166_p6), %s920_s26, 512  }
 0x651   : > { %1420 = vsyncadd (!%p1166_p6), %s920_s26, 4294966784  ;;  %p23_p0 = scmp.ge.s32.totalorder %s1601_s14, 4   ;;  %s1865_s18 = smov %s1427_s19 }
 0x652   : > { %s1866_s19 = smov %s1431_s20  ;;  %s1867_s20 = smov %s1617_s27 }
 0x653   : > { %s1868_s21 = smov %s1601_s14  ;;  %25 = sbr.rel (!%p23_p0) target bundleno = 8 (0x8), region = 109 }
 0x65a   :  { %925 = vsyncpa [#allocation4], 1 }
 0x65b   :  { %927 = vsyncpa [#allocation4 + $0x1], 1 }
 0x65c   :  { %928 = vsyncpa [#allocation7], 1 }
 0x65d   :  { %929 = vsyncpa [#allocation5], 1 }
 0x65e   :  { %931 = vsyncpa [#allocation5 + $0x1], 1 }
 0x65f   :  { %932 = vsyncpa [#allocation11], 1 }
 0x660   :  { %934 = vsyncpa [#allocation11 + $0x1], 1 }

</bundles_post_ra>
